<compile_context>
chip_gen: v6e
topology: v6e:2x2x1
jax: 0.10.0
libtpu: 0.0.40
codegen_flags: <defaults>
</compile_context>

<pallas_src>
import functools

import jax
import jax.numpy as jnp
from jax.experimental import pallas as pl
from jax.experimental.pallas import tpu as pltpu

_LANE_WIDTH = 512            # lanes per slab row (multiple of 128)
_TILE_BYTES = 4 * 1024 * 1024
_VMEM_LIMIT = 32 * 1024 * 1024


def _battery_kernel(x_ref, u_ref, o_ref, *, scale, lo, hi):
    # Pure VPU elementwise update; HBM-bandwidth bound.
    o_ref[...] = jnp.clip(x_ref[...] + u_ref[...] * scale, lo, hi)


def _choose_tile_rows(m_rows, lane_width, itemsize, tile_bytes):
    """Row tile (multiple of 8) targeting ~tile_bytes blocks and >=2 grid steps."""
    if m_rows <= 8:
        return m_rows  # tiny slab: single full-extent block
    rows_by_bytes = max(8, (tile_bytes // (lane_width * itemsize)) // 8 * 8)
    target_steps = 4 if m_rows >= 32 else 2
    rows_by_steps = max(8, ((m_rows + target_steps - 1) // target_steps + 7) // 8 * 8)
    return min(rows_by_bytes, rows_by_steps)


def battery_forward(x, u, *, eff, capacity, dt=60.0,
                    lane_width=_LANE_WIDTH, tile_bytes=_TILE_BYTES):
    """Pallas implementation of BatteryModel.forward.

    x: (B, nx) float32 state of charge; u: (B, nu) float32 power; nx == nu.
    """
    assert x.ndim == 2 and u.ndim == 2
    assert x.shape == u.shape, "nx must equal nu for the elementwise update"

    B, N = x.shape
    dtype = x.dtype
    itemsize = jnp.dtype(dtype).itemsize

    # ---- Present a lane-dense slab: (B, N) -> (M, lane_width), pad once. ----
    total = B * N
    padded = ((total + lane_width - 1) // lane_width) * lane_width
    m_rows = padded // lane_width

    xf = x.reshape(-1)
    uf = u.reshape(-1)
    if padded != total:
        xf = jnp.pad(xf, (0, padded - total))
        uf = jnp.pad(uf, (0, padded - total))
    x2 = xf.reshape(m_rows, lane_width)
    u2 = uf.reshape(m_rows, lane_width)

    tile_rows = _choose_tile_rows(m_rows, lane_width, itemsize, tile_bytes)
    grid = (pl.cdiv(m_rows, tile_rows),)

    kernel = functools.partial(
        _battery_kernel,
        scale=float(eff) / float(dt),
        lo=float(capacity) * 0.2,
        hi=float(capacity),
    )

    cost = pl.CostEstimate(
        flops=3 * m_rows * lane_width,
        transcendentals=0,
        bytes_accessed=3 * m_rows * lane_width * itemsize,
    )

    out2 = pl.pallas_call(
        kernel,
        out_shape=jax.ShapeDtypeStruct((m_rows, lane_width), dtype),
        grid=grid,
        in_specs=[
            pl.BlockSpec((tile_rows, lane_width), lambda i: (i, 0)),
            pl.BlockSpec((tile_rows, lane_width), lambda i: (i, 0)),
        ],
        out_specs=pl.BlockSpec((tile_rows, lane_width), lambda i: (i, 0)),
        input_output_aliases={0: 0},  # state update: reuse x's buffer if donated
        compiler_params=pltpu.CompilerParams(
            dimension_semantics=("parallel",),
            vmem_limit_bytes=_VMEM_LIMIT,
        ),
        cost_estimate=cost,
    )(x2, u2)

    return out2.reshape(-1)[:total].reshape(B, N)


def battery_forward_ref(x, u, *, eff, capacity, dt=60.0):
    # Exact PyTorch op order for the correctness reference.
    y = x + eff * u / dt
    return jnp.clip(y, capacity * 0.2, capacity)


if __name__ == "__main__":
    eff = 0.95
    capacity = 13.5
    dt = 60.0

    key = jax.random.PRNGKey(0)
    k1, k2, k3, k4, k5, k6 = jax.random.split(key, 6)

    # Case 1: typical BatteryModel shape — nx = nu = 1 (state of charge).
    B1, N1 = 16, 1
    x1 = jax.random.uniform(k1, (B1, N1), jnp.float32, 0.0, capacity)
    u1 = jax.random.uniform(k2, (B1, N1), jnp.float32, -capacity, capacity)
    out1 = jax.block_until_ready(
        battery_forward(x1, u1, eff=eff, capacity=capacity, dt=dt))
    ref1 = battery_forward_ref(x1, u1, eff=eff, capacity=capacity, dt=dt)
    assert out1.shape == (B1, N1) and out1.dtype == jnp.float32
    assert jnp.allclose(out1, ref1, atol=1e-5, rtol=1e-5)

    # Case 2: wider feature dim; exercises the multi-step grid + ragged tail
    # (B*N = 5120 -> slab (10, 512), tile_rows = 8, grid = (2,)).
    B2, N2 = 40, 128
    x2 = jax.random.uniform(k3, (B2, N2), jnp.float32, 0.0, capacity)
    u2 = jax.random.uniform(k4, (B2, N2), jnp.float32, -capacity, capacity)
    out2 = jax.block_until_ready(
        battery_forward(x2, u2, eff=eff, capacity=capacity, dt=dt))
    ref2 = battery_forward_ref(x2, u2, eff=eff, capacity=capacity, dt=dt)
    assert out2.shape == (B2, N2) and out2.dtype == jnp.float32
    assert jnp.allclose(out2, ref2, atol=1e-5, rtol=1e-5)

    # Case 3: non-multiple-of-lane feature dim; exercises the padding path.
    B3, N3 = 8, 3
    x3 = jax.random.uniform(k5, (B3, N3), jnp.float32, 0.0, capacity)
    u3 = jax.random.uniform(k6, (B3, N3), jnp.float32, -capacity, capacity)
    out3 = jax.block_until_ready(
        battery_forward(x3, u3, eff=eff, capacity=capacity, dt=dt))
    ref3 = battery_forward_ref(x3, u3, eff=eff, capacity=capacity, dt=dt)
    assert out3.shape == (B3, N3) and out3.dtype == jnp.float32
    assert jnp.allclose(out3, ref3, atol=1e-5, rtol=1e-5)

    print("KERNEL_OK")
</pallas_src>

<mosaic_0001>
module attributes {stable_mosaic.version = 11 : i64} {
  func.func @_battery_kernel(%arg0: i32, %arg1: memref<1x512xf32, #tpu.memory_space<vmem>>, %arg2: memref<1x512xf32, #tpu.memory_space<vmem>>, %arg3: memref<1x512xf32, #tpu.memory_space<vmem>>) attributes {dimension_semantics = [#tpu.dimension_semantics<parallel>], iteration_bounds = array<i64: 1>, scalar_prefetch = 0 : i64, scratch_operands = 0 : i64, tpu.core_type = #tpu.core_type<tc>, window_params = [{transform_indices = @transform_0, window_bounds = array<i64: 1, 512>}, {transform_indices = @transform_1, window_bounds = array<i64: 1, 512>}, {transform_indices = @transform_2, window_bounds = array<i64: 1, 512>}]} {
    %c0 = arith.constant 0 : index
    %c0_0 = arith.constant 0 : index
    %0 = vector.load %arg1[%c0, %c0_0] : memref<1x512xf32, #tpu.memory_space<vmem>>, vector<1x512xf32>
    %c0_1 = arith.constant 0 : index
    %c0_2 = arith.constant 0 : index
    %1 = vector.load %arg2[%c0_1, %c0_2] : memref<1x512xf32, #tpu.memory_space<vmem>>, vector<1x512xf32>
    %cst = arith.constant 0.0158333331 : f32
    %2 = vector.broadcast %cst : f32 to vector<1x512xf32>
    %3 = arith.mulf %1, %2 : vector<1x512xf32>
    %4 = arith.addf %0, %3 : vector<1x512xf32>
    %cst_3 = arith.constant 2.700000e+00 : f32
    %cst_4 = arith.constant 1.350000e+01 : f32
    %5 = vector.broadcast %cst_3 : f32 to vector<1x512xf32>
    %6 = arith.maximumf %5, %4 : vector<1x512xf32>
    %7 = vector.broadcast %cst_4 : f32 to vector<1x512xf32>
    %8 = arith.minimumf %7, %6 : vector<1x512xf32>
    %c0_5 = arith.constant 0 : index
    %c0_6 = arith.constant 0 : index
    %9 = vector.load %arg3[%c0_5, %c0_6] : memref<1x512xf32, #tpu.memory_space<vmem>>, vector<1x512xf32>
    tpu.vector_store %arg3[%c0_5, %c0_6], %8 {strides = array<i32>} : memref<1x512xf32, #tpu.memory_space<vmem>>, vector<1x512xf32>,
    return
  }
  func.func @transform_0(%arg0: i32) -> (i32, i32) {
    %c0_i32 = arith.constant 0 : i32
    %c0_i32_0 = arith.constant 0 : i32
    return %arg0, %c0_i32 : i32, i32
  }
  func.func @transform_1(%arg0: i32) -> (i32, i32) {
    %c0_i32 = arith.constant 0 : i32
    %c0_i32_0 = arith.constant 0 : i32
    return %arg0, %c0_i32 : i32, i32
  }
  func.func @transform_2(%arg0: i32) -> (i32, i32) {
    %c0_i32 = arith.constant 0 : i32
    %c0_i32_0 = arith.constant 0 : i32
    return %arg0, %c0_i32 : i32, i32
  }
}

</mosaic_0001>

<bundles_post_ra>
// kernel: tpu_custom_call.1
= control target key start
LH: loop header
LB: loop body
LE: loop exit
PB: predicated region body
PF: predicated region fallthrough
CT: control target
= control target key end

     0   :  { %7 = vsyncpa [#allocation3], 0  ;;  %s122_s0 = inlined_call_operand.hbm [shape: f32[1,512], index: 0, kind: input, shape index: {}, may-alias: {0,2}]   ;;  %s123_s1 = inlined_call_operand.vmem [shape: f32[1,512], index: 1, kind: input, shape index: {}]   ;;  %s124_s2 = inlined_call_operand.hbm [shape: f32[1,512], index: 2, kind: output, shape index: {}, may-alias: {0,2}]  }
   0x1   :  { %8 = vsyncpa [#allocation4], 0  ;;  %s96_s9 = smov [#allocation2]  }
   0x2   :  { %s15_s10 = sshll.u32 %s96_s9, 4  ;;  %s16_s10 = int_to_ptr.vmem [resolvable:$true] %s15_s10 }
   0x3   :  { %s60_s11 = scalar_lea.vmem %s16_s10, 64  ;;  %p65_p1 = scmp.lt.s32.totalorder %s16_s10, %s16_s10 }
   0x4   :  { %p61_p0 = scmp.ne.s32.totalorder %s16_s10, %s60_s11  ;;  %p66_p2 = scmp.lt.s32.totalorder %s60_s11, %s60_s11 }
   0x6   :  { %p67_p3 = por %p66_p2, %p65_p1 }
   0x8   :  { %p68_p4 = pnand %p67_p3, %p61_p0 }
   0xa   :  { %71 = shalt.err (!%p68_p4)
}
   0xb   :  { %18 = dma.hbm_to_vmem [thread:$0]  %s122_s0, 64, %s16_s10, [#allocation3]  }
   0xc   :  { %92 = dma.done.wait [#allocation3], 64  }
   0xd   :  { %93 = vsyncadd [#allocation3], 4294967232  ;;  %v24_v0 = vld [vmem:[#allocation2] sm:$0xf]  ;;  %v30_v3 = vlaneseq  ;;  %s97_s16 = smov [#allocation5]  }
   0xe   :  { %v25_v1 = vld [vmem:[%s123_s1] sm:$0xf]  ;;  %s41_s17 = sshll.u32 %s97_s16, 4  ;;  %s42_s17 = int_to_ptr.vmem [resolvable:$true] %s41_s17 }
   0xf   :  { %v26_v2 = vmul.f32 0.015833333, %v25_v1  ;;  %vm32_vm0 = vcmp.lt.s32.totalorder %v30_v3, 512  ;;  %s72_s18 = scalar_lea.vmem %s42_s17, 64  ;;  %p77_p6 = scmp.lt.s32.totalorder %s42_s17, %s42_s17 }
  0x10   :  { %p73_p5 = scmp.ne.s32.totalorder %s42_s17, %s72_s18  ;;  %p78_p7 = scmp.lt.s32.totalorder %s72_s18, %s72_s18 }
  0x11   :  { %v27_v4 = vadd.f32 %v26_v2, %v24_v0 }
  0x12   :  { %p79_p8 = por %p78_p7, %p77_p6 }
  0x13   :  { %v28_v5 = vmax.f32 %v27_v4, 2.7 }
  0x14   :  { %p80_p9 = pnand %p79_p8, %p73_p5 }
  0x15   :  { %v29_v6 = vmin.f32 %v28_v5, 13.5 }
  0x17   :  { %34 = vst.msk [vmem:[#allocation5] sm:$0xf] %vm32_vm0, %v29_v6 }
  0x18   :  { %83 = shalt.err (!%p80_p9)
}
  0x19   :  { %44 = dma.vmem_to_hbm [thread:$0]  %s42_s17, 64, %s124_s2, [#allocation4]  }
  0x1a   :  { %94 = dma.done.wait [#allocation4], 64  }
  0x1b   :  { %95 = vsyncadd [#allocation4], 4294967232 }
  0x1c   :  { %48 = vsyncpa [#allocation3], 1 }
  0x1d   :  { %49 = vsyncpa [#allocation4], 1 }

</bundles_post_ra>
